<compile_context>
chip_gen: v6e
topology: v6e:2x2x1
jax: 0.10.0
libtpu: 0.0.40
codegen_flags: <defaults>
</compile_context>

<pallas_src>
import jax
import jax.numpy as jnp
from jax import lax
from jax.experimental import pallas as pl
from jax.experimental.pallas import tpu as pltpu


# --------------------------------------------------------------------------
# Kernel A: sequential tanh recurrence -> hidden states (B, T, H) in bf16
# --------------------------------------------------------------------------
def _make_rnn_kernel(unroll):
    def kernel(x_ref, w_ih_ref, w_hh_ref, b_ref, h_out_ref, h_carry, h_seq):
        t_idx = pl.program_id(0)
        tT, B, E = x_ref.shape
        H = w_hh_ref.shape[0]

        @pl.when(t_idx == 0)
        def _():
            h_carry[...] = jnp.zeros_like(h_carry)          # h_0 = 0

        # ---- hoisted input projection: one big MXU matmul per chunk --------
        xw = jnp.dot(x_ref[...].reshape(tT * B, E), w_ih_ref[...],
                     preferred_element_type=jnp.float32)    # (tT*B, H) f32
        h_seq[...] = (xw + b_ref[...]).reshape(tT, B, H)    # pre-activations

        # ---- truly sequential part: only h @ W_hh^T + tanh remains ---------
        w_hh = w_hh_ref[...]                                 # (H, H) bf16

        def step(t, h):
            pre = h_seq[t] + jnp.dot(h.astype(w_hh.dtype), w_hh,
                                     preferred_element_type=jnp.float32)
            h_new = jnp.tanh(pre)                            # (B, H) f32
            h_seq[t] = h_new                                 # overwrite in place
            return h_new

        h_carry[...] = lax.fori_loop(0, tT, step, h_carry[...], unroll=unroll)

        # ---- emit the chunk's hidden states once, in (B, tT, H) bf16 -------
        for b in range(B):                                   # B is small, static
            h_out_ref[b] = h_seq[:, b, :].astype(h_out_ref.dtype)

    return kernel


# --------------------------------------------------------------------------
# Kernel B: tied output projection, fully parallel, logits emitted as (B,V,T)
# --------------------------------------------------------------------------
def _proj_kernel(h_ref, emb_ref, out_ref):
    # h_ref: (1, tT, H) bf16   emb_ref: (tV, H) bf16   out_ref: (1, tV, tT) f32
    out_ref[0] = lax.dot_general(
        emb_ref[...], h_ref[0],
        dimension_numbers=(((1,), (1,)), ((), ())),          # contract H
        preferred_element_type=jnp.float32)                  # (tV, tT)


# --------------------------------------------------------------------------
# Wrapper
# --------------------------------------------------------------------------
def _vmem_budget_bytes():
    """~75% of this generation's physical per-core VMEM (compiler headroom)."""
    try:
        cap = int(pltpu.get_tpu_info().vmem_capacity_bytes)
    except Exception:
        cap = 64 << 20              # conservative (v7x-sized) fallback
    return (cap * 3) // 4


def _pick_v_tile(V, target):
    """Largest multiple of 128 that divides V, capped at `target` (else V)."""
    if V % 128 != 0:
        return V
    best, t = 128, 128
    while t <= min(V, target):
        if V % t == 0:
            best = t
        t += 128
    return best


def _rnn_vmem_bytes(tT, B, E, H):
    return (2 * tT * B * E * 2        # x tile, bf16, double buffered
            + 2 * B * tT * H * 2      # h_out tile, bf16, double buffered
            + (E * H + H * H) * 2     # weights, bf16, single buffered
            + H * 4                   # bias
            + B * H * 4               # h carry scratch
            + tT * B * H * 4)         # per-chunk pre-activation / h scratch


def _proj_vmem_bytes(tT, tV, H):
    return (2 * tT * H * 2            # h tile, bf16
            + 2 * tV * H * 2          # emb tile, bf16
            + 2 * tV * tT * 4)        # logits tile, f32


def lm_rnn_forward(ids, emb_w, w_ih, w_hh, b_ih, b_hh,
                   *, t_chunk_rnn=None, t_chunk_proj=None, v_chunk=None):
    """ids: (B, T) int.  Returns (B, V, T) float32 — matches LM_RNN.forward."""
    B, T = ids.shape
    V, E = emb_w.shape
    H = w_hh.shape[0]
    assert E == H, "weight tying (output.weight = embedding.weight) needs E == H"

    budget = _vmem_budget_bytes()
    margin = 8 << 20

    # ---- tile selection (generation-aware; shrink until it fits VMEM) ------
    if t_chunk_proj is None:
        t_chunk_proj = 128 if T >= 128 else T
    tT_proj = t_chunk_proj
    T_pad = pl.cdiv(T, tT_proj) * tT_proj
    assert tT_proj % 128 == 0 or tT_proj == T_pad, \
        "projection T tile must be a multiple of 128 or the full (padded) T"

    tT_rnn = tT_proj if t_chunk_rnn is None else t_chunk_rnn
    assert T_pad % tT_rnn == 0 and (tT_rnn % 8 == 0 or tT_rnn == T_pad), \
        "recurrence T chunk must divide padded T and be a multiple of 8"
    while _rnn_vmem_bytes(tT_rnn, B, E, H) + margin > budget and tT_rnn % 16 == 0:
        tT_rnn //= 2

    if v_chunk is None:
        v_chunk = 1024 if budget > (80 << 20) else 512   # bigger tiles on v5e/v6e
    tV = _pick_v_tile(V, v_chunk)
    while _proj_vmem_bytes(tT_proj, tV, H) + margin > budget:
        if tV % 256 == 0:
            tV //= 2
        elif tT_proj % 256 == 0:
            tT_proj //= 2
        else:
            break

    # ---- operands: bf16 matmul inputs, f32 accumulation inside kernels -----
    emb_f32 = emb_w.astype(jnp.float32)
    emb_bf16 = emb_f32.astype(jnp.bfloat16)      # the single tied vocab copy
    w_ih_t = w_ih.T.astype(jnp.bfloat16)         # (E, H)
    w_hh_t = w_hh.T.astype(jnp.bfloat16)         # (H, H)
    bias = (b_ih + b_hh).reshape(1, H).astype(jnp.float32)

    # Embedding = real gather (padding row 0 is already all-zeros).
    # TODO(synk): optionally fuse the gather into kernel A via scalar-prefetched
    # ids + per-row DMA to avoid materializing x in HBM (low priority).
    x = emb_bf16[ids.T.astype(jnp.int32)]        # (T, B, E) bf16
    if T_pad != T:
        x = jnp.pad(x, ((0, T_pad - T), (0, 0), (0, 0)))

    unroll = max(1, min(tT_rnn, 8))
    vmem_rnn = int(min(_rnn_vmem_bytes(tT_rnn, B, E, H) + margin, budget))
    vmem_proj = int(min(_proj_vmem_bytes(tT_proj, tV, H) + margin, budget))

    # ---- kernel A: sequential recurrence --------------------------------------
    h_states = pl.pallas_call(
        _make_rnn_kernel(unroll),
        out_shape=jax.ShapeDtypeStruct((B, T_pad, H), jnp.bfloat16),
        grid_spec=pltpu.PrefetchScalarGridSpec(
            num_scalar_prefetch=0,
            grid=(T_pad // tT_rnn,),
            in_specs=[
                pl.BlockSpec((tT_rnn, B, E), lambda t: (t, 0, 0)),
                pl.BlockSpec((E, H), lambda t: (0, 0),
                             pipeline_mode=pl.Buffered(1)),   # grid-invariant
                pl.BlockSpec((H, H), lambda t: (0, 0),
                             pipeline_mode=pl.Buffered(1)),
                pl.BlockSpec((1, H), lambda t: (0, 0),
                             pipeline_mode=pl.Buffered(1)),
            ],
            out_specs=pl.BlockSpec((B, tT_rnn, H), lambda t: (0, t, 0)),
            scratch_shapes=[
                pltpu.VMEM((B, H), jnp.float32),           # h carried across chunks
                pltpu.VMEM((tT_rnn, B, H), jnp.float32),   # per-chunk pre-act / h
            ]),
        compiler_params=pltpu.CompilerParams(
            dimension_semantics=("arbitrary",),            # sequential in t
            vmem_limit_bytes=vmem_rnn),
    )(x, w_ih_t, w_hh_t, bias)

    # ---- kernel B: tied projection, all grid axes independent ----------------
    logits = pl.pallas_call(
        _proj_kernel,
        out_shape=jax.ShapeDtypeStruct((B, V, T_pad), jnp.float32),
        grid_spec=pltpu.PrefetchScalarGridSpec(
            num_scalar_prefetch=0,
            grid=(B, V // tV, T_pad // tT_proj),
            in_specs=[
                pl.BlockSpec((1, tT_proj, H), lambda b, v, t: (b, t, 0)),
                pl.BlockSpec((tV, H), lambda b, v, t: (v, 0)),
            ],
            out_specs=pl.BlockSpec((1, tV, tT_proj), lambda b, v, t: (b, v, t)),
        ),
        compiler_params=pltpu.CompilerParams(
            dimension_semantics=("parallel", "parallel", "parallel"),
            vmem_limit_bytes=vmem_proj),
    )(h_states, emb_bf16)

    return logits[:, :, :T]          # already (B, V, T): no wrapper-side permute


# --------------------------------------------------------------------------
# Pure-JAX reference of LM_RNN.forward for correctness checking
# --------------------------------------------------------------------------
def _reference_forward(ids, emb_w, w_ih, w_hh, b_ih, b_hh):
    x = emb_w[ids]                                    # (B, T, E)
    B, T, _ = x.shape
    H = w_hh.shape[0]
    h = jnp.zeros((B, H), jnp.float32)
    outs = []
    for t in range(T):
        h = jnp.tanh(x[:, t] @ w_ih.T + b_ih + h @ w_hh.T + b_hh)
        outs.append(h @ emb_w.T)                      # tied output, no bias
    logits = jnp.stack(outs, axis=1)                  # (B, T, V)
    return jnp.transpose(logits, (0, 2, 1))           # (B, V, T)


if __name__ == "__main__":
    B, T = 2, 16
    emb_size = hidden_size = 32                       # tying requires E == H
    output_size = 256                                 # vocab size V
    pad_index = 0

    key = jax.random.PRNGKey(0)
    k_ids, k_emb, k_wih, k_whh, k_bih, k_bhh = jax.random.split(key, 6)

    ids = jax.random.randint(k_ids, (B, T), 0, output_size, dtype=jnp.int32)
    ids = ids.at[0, -1].set(pad_index)                # exercise the padding row

    emb_w = 0.1 * jax.random.normal(k_emb, (output_size, emb_size), jnp.float32)
    emb_w = emb_w.at[pad_index].set(0.0)              # nn.Embedding padding_idx row
    w_ih = 0.1 * jax.random.normal(k_wih, (hidden_size, emb_size), jnp.float32)
    w_hh = 0.1 * jax.random.normal(k_whh, (hidden_size, hidden_size), jnp.float32)
    b_ih = 0.1 * jax.random.normal(k_bih, (hidden_size,), jnp.float32)
    b_hh = 0.1 * jax.random.normal(k_bhh, (hidden_size,), jnp.float32)

    # t_chunk_rnn=8 gives 2 recurrence chunks (exercises the cross-chunk hidden
    # carry); v_chunk=128 gives 2 vocab tiles on the projection grid.
    out = lm_rnn_forward(ids, emb_w, w_ih, w_hh, b_ih, b_hh,
                         t_chunk_rnn=8, v_chunk=128)
    out = jax.block_until_ready(out)

    ref = _reference_forward(ids, emb_w, w_ih, w_hh, b_ih, b_hh)
    assert out.shape == (B, output_size, T), out.shape
    assert jnp.allclose(out, ref, atol=2e-2, rtol=2e-2), (
        "mismatch vs reference; max abs err = "
        f"{float(jnp.max(jnp.abs(out - ref)))}")

    print("KERNEL_OK")
</pallas_src>

<mosaic_0001>
module attributes {stable_mosaic.version = 11 : i64} {
  func.func @kernel(%arg0: i32, %arg1: memref<8x2x32xbf16, #tpu.memory_space<vmem>>, %arg2: memref<32x32xbf16, #tpu.memory_space<vmem>>, %arg3: memref<32x32xbf16, #tpu.memory_space<vmem>>, %arg4: memref<1x32xf32, #tpu.memory_space<vmem>>, %arg5: memref<2x8x32xbf16, #tpu.memory_space<vmem>>, %arg6: memref<2x32xf32, #tpu.memory_space<vmem>>, %arg7: memref<8x2x32xf32, #tpu.memory_space<vmem>>) attributes {dimension_semantics = [#tpu.dimension_semantics<arbitrary>], iteration_bounds = array<i64: 2>, scalar_prefetch = 0 : i64, scratch_operands = 2 : i64, tpu.core_type = #tpu.core_type<tc>, window_params = [{transform_indices = @transform_0, window_bounds = array<i64: 8, 2, 32>}, {pipeline_mode = #tpu.pipeline_mode<synchronous>, transform_indices = @transform_1, window_bounds = array<i64: 32, 32>}, {pipeline_mode = #tpu.pipeline_mode<synchronous>, transform_indices = @transform_2, window_bounds = array<i64: 32, 32>}, {pipeline_mode = #tpu.pipeline_mode<synchronous>, transform_indices = @transform_3, window_bounds = array<i64: 1, 32>}, {transform_indices = @transform_4, window_bounds = array<i64: 2, 8, 32>}]} {
    %c0_i32 = arith.constant 0 : i32
    %0 = arith.cmpi eq, %arg0, %c0_i32 : i32
    %1 = arith.extui %0 : i1 to i32
    %c0_i32_0 = arith.constant 0 : i32
    %2 = arith.cmpi ne, %1, %c0_i32_0 : i32
    scf.if %2 {
      %cst_68 = arith.constant 0.000000e+00 : f32
      %115 = vector.broadcast %cst_68 : f32 to vector<2x32xf32>
      %c0_69 = arith.constant 0 : index
      %c0_70 = arith.constant 0 : index
      %116 = vector.load %arg6[%c0_69, %c0_70] : memref<2x32xf32, #tpu.memory_space<vmem>>, vector<2x32xf32>
      tpu.vector_store %arg6[%c0_69, %c0_70], %115 {strides = array<i32>} : memref<2x32xf32, #tpu.memory_space<vmem>>, vector<2x32xf32>,
    } else {
    }
    %c0 = arith.constant 0 : index
    %c0_1 = arith.constant 0 : index
    %c0_2 = arith.constant 0 : index
    %3 = vector.load %arg1[%c0, %c0_1, %c0_2] : memref<8x2x32xbf16, #tpu.memory_space<vmem>>, vector<8x2x32xbf16>
    %4 = vector.shape_cast %3 : vector<8x2x32xbf16> to vector<16x32xbf16>
    %c0_3 = arith.constant 0 : index
    %c0_4 = arith.constant 0 : index
    %5 = vector.load %arg2[%c0_3, %c0_4] : memref<32x32xbf16, #tpu.memory_space<vmem>>, vector<32x32xbf16>
    %cst = arith.constant dense<0.000000e+00> : vector<16x32xf32>
    %6 = tpu.matmul %4, %5, %cst {dimension_numbers = #tpu.dot_dimension_numbers<[1], [0], [0], [1], [0, 0, 1, 1], [], []>} : vector<16x32xbf16>, vector<32x32xbf16>, vector<16x32xf32> -> vector<16x32xf32>
    %c0_5 = arith.constant 0 : index
    %c0_6 = arith.constant 0 : index
    %7 = vector.load %arg4[%c0_5, %c0_6] : memref<1x32xf32, #tpu.memory_space<vmem>>, vector<1x32xf32>
    %8 = vector.broadcast %7 : vector<1x32xf32> to vector<16x32xf32>
    %9 = arith.addf %6, %8 : vector<16x32xf32>
    %10 = vector.shape_cast %9 : vector<16x32xf32> to vector<8x2x32xf32>
    %c0_7 = arith.constant 0 : index
    %c0_8 = arith.constant 0 : index
    %c0_9 = arith.constant 0 : index
    %11 = vector.load %arg7[%c0_7, %c0_8, %c0_9] : memref<8x2x32xf32, #tpu.memory_space<vmem>>, vector<8x2x32xf32>
    tpu.vector_store %arg7[%c0_7, %c0_8, %c0_9], %10 {strides = array<i32>} : memref<8x2x32xf32, #tpu.memory_space<vmem>>, vector<8x2x32xf32>,
    %c0_10 = arith.constant 0 : index
    %c0_11 = arith.constant 0 : index
    %12 = vector.load %arg3[%c0_10, %c0_11] : memref<32x32xbf16, #tpu.memory_space<vmem>>, vector<32x32xbf16>
    %c0_12 = arith.constant 0 : index
    %c0_13 = arith.constant 0 : index
    %13 = vector.load %arg6[%c0_12, %c0_13] : memref<2x32xf32, #tpu.memory_space<vmem>>, vector<2x32xf32>
    %c0_i32_14 = arith.constant 0 : i32
    %14 = arith.index_cast %c0_i32_14 : i32 to index
    %c0_15 = arith.constant 0 : index
    %c0_16 = arith.constant 0 : index
    %15 = vector.load %arg7[%14, %c0_15, %c0_16] : memref<8x2x32xf32, #tpu.memory_space<vmem>>, vector<1x2x32xf32>
    %16 = vector.shape_cast %15 : vector<1x2x32xf32> to vector<2x32xf32>
    %17 = arith.truncf %13 : vector<2x32xf32> to vector<2x32xbf16>
    %cst_17 = arith.constant dense<0.000000e+00> : vector<2x32xf32>
    %18 = tpu.matmul %17, %12, %cst_17 {dimension_numbers = #tpu.dot_dimension_numbers<[1], [0], [0], [1], [0, 0, 1, 1], [], []>} : vector<2x32xbf16>, vector<32x32xbf16>, vector<2x32xf32> -> vector<2x32xf32>
    %19 = arith.addf %16, %18 : vector<2x32xf32>
    %20 = math.tanh %19 : vector<2x32xf32>
    %21 = arith.index_cast %c0_i32_14 : i32 to index
    %c0_18 = arith.constant 0 : index
    %c0_19 = arith.constant 0 : index
    %22 = vector.load %arg7[%21, %c0_18, %c0_19] : memref<8x2x32xf32, #tpu.memory_space<vmem>>, vector<1x2x32xf32>
    %23 = vector.shape_cast %22 : vector<1x2x32xf32> to vector<2x32xf32>
    %24 = vector.shape_cast %20 : vector<2x32xf32> to vector<1x2x32xf32>
    tpu.vector_store %arg7[%21, %c0_18, %c0_19], %24 {strides = array<i32>} : memref<8x2x32xf32, #tpu.memory_space<vmem>>, vector<1x2x32xf32>,
    %c1_i32 = arith.constant 1 : i32
    %25 = arith.index_cast %c1_i32 : i32 to index
    %c0_20 = arith.constant 0 : index
    %c0_21 = arith.constant 0 : index
    %26 = vector.load %arg7[%25, %c0_20, %c0_21] : memref<8x2x32xf32, #tpu.memory_space<vmem>>, vector<1x2x32xf32>
    %27 = vector.shape_cast %26 : vector<1x2x32xf32> to vector<2x32xf32>
    %28 = arith.truncf %20 : vector<2x32xf32> to vector<2x32xbf16>
    %cst_22 = arith.constant dense<0.000000e+00> : vector<2x32xf32>
    %29 = tpu.matmul %28, %12, %cst_22 {dimension_numbers = #tpu.dot_dimension_numbers<[1], [0], [0], [1], [0, 0, 1, 1], [], []>} : vector<2x32xbf16>, vector<32x32xbf16>, vector<2x32xf32> -> vector<2x32xf32>
    %30 = arith.addf %27, %29 : vector<2x32xf32>
    %31 = math.tanh %30 : vector<2x32xf32>
    %32 = arith.index_cast %c1_i32 : i32 to index
    %c0_23 = arith.constant 0 : index
    %c0_24 = arith.constant 0 : index
    %33 = vector.load %arg7[%32, %c0_23, %c0_24] : memref<8x2x32xf32, #tpu.memory_space<vmem>>, vector<1x2x32xf32>
    %34 = vector.shape_cast %33 : vector<1x2x32xf32> to vector<2x32xf32>
    %35 = vector.shape_cast %31 : vector<2x32xf32> to vector<1x2x32xf32>
    tpu.vector_store %arg7[%32, %c0_23, %c0_24], %35 {strides = array<i32>} : memref<8x2x32xf32, #tpu.memory_space<vmem>>, vector<1x2x32xf32>,
    %c2_i32 = arith.constant 2 : i32
    %36 = arith.index_cast %c2_i32 : i32 to index
    %c0_25 = arith.constant 0 : index
    %c0_26 = arith.constant 0 : index
    %37 = vector.load %arg7[%36, %c0_25, %c0_26] : memref<8x2x32xf32, #tpu.memory_space<vmem>>, vector<1x2x32xf32>
    %38 = vector.shape_cast %37 : vector<1x2x32xf32> to vector<2x32xf32>
    %39 = arith.truncf %31 : vector<2x32xf32> to vector<2x32xbf16>
    %cst_27 = arith.constant dense<0.000000e+00> : vector<2x32xf32>
    %40 = tpu.matmul %39, %12, %cst_27 {dimension_numbers = #tpu.dot_dimension_numbers<[1], [0], [0], [1], [0, 0, 1, 1], [], []>} : vector<2x32xbf16>, vector<32x32xbf16>, vector<2x32xf32> -> vector<2x32xf32>
    %41 = arith.addf %38, %40 : vector<2x32xf32>
    %42 = math.tanh %41 : vector<2x32xf32>
    %43 = arith.index_cast %c2_i32 : i32 to index
    %c0_28 = arith.constant 0 : index
    %c0_29 = arith.constant 0 : index
    %44 = vector.load %arg7[%43, %c0_28, %c0_29] : memref<8x2x32xf32, #tpu.memory_space<vmem>>, vector<1x2x32xf32>
    %45 = vector.shape_cast %44 : vector<1x2x32xf32> to vector<2x32xf32>
    %46 = vector.shape_cast %42 : vector<2x32xf32> to vector<1x2x32xf32>
    tpu.vector_store %arg7[%43, %c0_28, %c0_29], %46 {strides = array<i32>} : memref<8x2x32xf32, #tpu.memory_space<vmem>>, vector<1x2x32xf32>,
    %c3_i32 = arith.constant 3 : i32
    %47 = arith.index_cast %c3_i32 : i32 to index
    %c0_30 = arith.constant 0 : index
    %c0_31 = arith.constant 0 : index
    %48 = vector.load %arg7[%47, %c0_30, %c0_31] : memref<8x2x32xf32, #tpu.memory_space<vmem>>, vector<1x2x32xf32>
    %49 = vector.shape_cast %48 : vector<1x2x32xf32> to vector<2x32xf32>
    %50 = arith.truncf %42 : vector<2x32xf32> to vector<2x32xbf16>
    %cst_32 = arith.constant dense<0.000000e+00> : vector<2x32xf32>
    %51 = tpu.matmul %50, %12, %cst_32 {dimension_numbers = #tpu.dot_dimension_numbers<[1], [0], [0], [1], [0, 0, 1, 1], [], []>} : vector<2x32xbf16>, vector<32x32xbf16>, vector<2x32xf32> -> vector<2x32xf32>
    %52 = arith.addf %49, %51 : vector<2x32xf32>
    %53 = math.tanh %52 : vector<2x32xf32>
    %54 = arith.index_cast %c3_i32 : i32 to index
    %c0_33 = arith.constant 0 : index
    %c0_34 = arith.constant 0 : index
    %55 = vector.load %arg7[%54, %c0_33, %c0_34] : memref<8x2x32xf32, #tpu.memory_space<vmem>>, vector<1x2x32xf32>
    %56 = vector.shape_cast %55 : vector<1x2x32xf32> to vector<2x32xf32>
    %57 = vector.shape_cast %53 : vector<2x32xf32> to vector<1x2x32xf32>
    tpu.vector_store %arg7[%54, %c0_33, %c0_34], %57 {strides = array<i32>} : memref<8x2x32xf32, #tpu.memory_space<vmem>>, vector<1x2x32xf32>,
    %c4_i32 = arith.constant 4 : i32
    %58 = arith.index_cast %c4_i32 : i32 to index
    %c0_35 = arith.constant 0 : index
    %c0_36 = arith.constant 0 : index
    %59 = vector.load %arg7[%58, %c0_35, %c0_36] : memref<8x2x32xf32, #tpu.memory_space<vmem>>, vector<1x2x32xf32>
    %60 = vector.shape_cast %59 : vector<1x2x32xf32> to vector<2x32xf32>
    %61 = arith.truncf %53 : vector<2x32xf32> to vector<2x32xbf16>
    %cst_37 = arith.constant dense<0.000000e+00> : vector<2x32xf32>
    %62 = tpu.matmul %61, %12, %cst_37 {dimension_numbers = #tpu.dot_dimension_numbers<[1], [0], [0], [1], [0, 0, 1, 1], [], []>} : vector<2x32xbf16>, vector<32x32xbf16>, vector<2x32xf32> -> vector<2x32xf32>
    %63 = arith.addf %60, %62 : vector<2x32xf32>
    %64 = math.tanh %63 : vector<2x32xf32>
    %65 = arith.index_cast %c4_i32 : i32 to index
    %c0_38 = arith.constant 0 : index
    %c0_39 = arith.constant 0 : index
    %66 = vector.load %arg7[%65, %c0_38, %c0_39] : memref<8x2x32xf32, #tpu.memory_space<vmem>>, vector<1x2x32xf32>
    %67 = vector.shape_cast %66 : vector<1x2x32xf32> to vector<2x32xf32>
    %68 = vector.shape_cast %64 : vector<2x32xf32> to vector<1x2x32xf32>
    tpu.vector_store %arg7[%65, %c0_38, %c0_39], %68 {strides = array<i32>} : memref<8x2x32xf32, #tpu.memory_space<vmem>>, vector<1x2x32xf32>,
    %c5_i32 = arith.constant 5 : i32
    %69 = arith.index_cast %c5_i32 : i32 to index
    %c0_40 = arith.constant 0 : index
    %c0_41 = arith.constant 0 : index
    %70 = vector.load %arg7[%69, %c0_40, %c0_41] : memref<8x2x32xf32, #tpu.memory_space<vmem>>, vector<1x2x32xf32>
    %71 = vector.shape_cast %70 : vector<1x2x32xf32> to vector<2x32xf32>
    %72 = arith.truncf %64 : vector<2x32xf32> to vector<2x32xbf16>
    %cst_42 = arith.constant dense<0.000000e+00> : vector<2x32xf32>
    %73 = tpu.matmul %72, %12, %cst_42 {dimension_numbers = #tpu.dot_dimension_numbers<[1], [0], [0], [1], [0, 0, 1, 1], [], []>} : vector<2x32xbf16>, vector<32x32xbf16>, vector<2x32xf32> -> vector<2x32xf32>
    %74 = arith.addf %71, %73 : vector<2x32xf32>
    %75 = math.tanh %74 : vector<2x32xf32>
    %76 = arith.index_cast %c5_i32 : i32 to index
    %c0_43 = arith.constant 0 : index
    %c0_44 = arith.constant 0 : index
    %77 = vector.load %arg7[%76, %c0_43, %c0_44] : memref<8x2x32xf32, #tpu.memory_space<vmem>>, vector<1x2x32xf32>
    %78 = vector.shape_cast %77 : vector<1x2x32xf32> to vector<2x32xf32>
    %79 = vector.shape_cast %75 : vector<2x32xf32> to vector<1x2x32xf32>
    tpu.vector_store %arg7[%76, %c0_43, %c0_44], %79 {strides = array<i32>} : memref<8x2x32xf32, #tpu.memory_space<vmem>>, vector<1x2x32xf32>,
    %c6_i32 = arith.constant 6 : i32
    %80 = arith.index_cast %c6_i32 : i32 to index
    %c0_45 = arith.constant 0 : index
    %c0_46 = arith.constant 0 : index
    %81 = vector.load %arg7[%80, %c0_45, %c0_46] : memref<8x2x32xf32, #tpu.memory_space<vmem>>, vector<1x2x32xf32>
    %82 = vector.shape_cast %81 : vector<1x2x32xf32> to vector<2x32xf32>
    %83 = arith.truncf %75 : vector<2x32xf32> to vector<2x32xbf16>
    %cst_47 = arith.constant dense<0.000000e+00> : vector<2x32xf32>
    %84 = tpu.matmul %83, %12, %cst_47 {dimension_numbers = #tpu.dot_dimension_numbers<[1], [0], [0], [1], [0, 0, 1, 1], [], []>} : vector<2x32xbf16>, vector<32x32xbf16>, vector<2x32xf32> -> vector<2x32xf32>
    %85 = arith.addf %82, %84 : vector<2x32xf32>
    %86 = math.tanh %85 : vector<2x32xf32>
    %87 = arith.index_cast %c6_i32 : i32 to index
    %c0_48 = arith.constant 0 : index
    %c0_49 = arith.constant 0 : index
    %88 = vector.load %arg7[%87, %c0_48, %c0_49] : memref<8x2x32xf32, #tpu.memory_space<vmem>>, vector<1x2x32xf32>
    %89 = vector.shape_cast %88 : vector<1x2x32xf32> to vector<2x32xf32>
    %90 = vector.shape_cast %86 : vector<2x32xf32> to vector<1x2x32xf32>
    tpu.vector_store %arg7[%87, %c0_48, %c0_49], %90 {strides = array<i32>} : memref<8x2x32xf32, #tpu.memory_space<vmem>>, vector<1x2x32xf32>,
    %c7_i32 = arith.constant 7 : i32
    %91 = arith.index_cast %c7_i32 : i32 to index
    %c0_50 = arith.constant 0 : index
    %c0_51 = arith.constant 0 : index
    %92 = vector.load %arg7[%91, %c0_50, %c0_51] : memref<8x2x32xf32, #tpu.memory_space<vmem>>, vector<1x2x32xf32>
    %93 = vector.shape_cast %92 : vector<1x2x32xf32> to vector<2x32xf32>
    %94 = arith.truncf %86 : vector<2x32xf32> to vector<2x32xbf16>
    %cst_52 = arith.constant dense<0.000000e+00> : vector<2x32xf32>
    %95 = tpu.matmul %94, %12, %cst_52 {dimension_numbers = #tpu.dot_dimension_numbers<[1], [0], [0], [1], [0, 0, 1, 1], [], []>} : vector<2x32xbf16>, vector<32x32xbf16>, vector<2x32xf32> -> vector<2x32xf32>
    %96 = arith.addf %93, %95 : vector<2x32xf32>
    %97 = math.tanh %96 : vector<2x32xf32>
    %98 = arith.index_cast %c7_i32 : i32 to index
    %c0_53 = arith.constant 0 : index
    %c0_54 = arith.constant 0 : index
    %99 = vector.load %arg7[%98, %c0_53, %c0_54] : memref<8x2x32xf32, #tpu.memory_space<vmem>>, vector<1x2x32xf32>
    %100 = vector.shape_cast %99 : vector<1x2x32xf32> to vector<2x32xf32>
    %101 = vector.shape_cast %97 : vector<2x32xf32> to vector<1x2x32xf32>
    tpu.vector_store %arg7[%98, %c0_53, %c0_54], %101 {strides = array<i32>} : memref<8x2x32xf32, #tpu.memory_space<vmem>>, vector<1x2x32xf32>,
    %c8_i32 = arith.constant 8 : i32
    %c0_55 = arith.constant 0 : index
    %c0_56 = arith.constant 0 : index
    %102 = vector.load %arg6[%c0_55, %c0_56] : memref<2x32xf32, #tpu.memory_space<vmem>>, vector<2x32xf32>
    tpu.vector_store %arg6[%c0_55, %c0_56], %97 {strides = array<i32>} : memref<2x32xf32, #tpu.memory_space<vmem>>, vector<2x32xf32>,
    %c0_57 = arith.constant 0 : index
    %c0_58 = arith.constant 0 : index
    %c0_59 = arith.constant 0 : index
    %103 = vector.load %arg7[%c0_57, %c0_58, %c0_59] : memref<8x2x32xf32, #tpu.memory_space<vmem>>, vector<8x1x32xf32>
    %104 = vector.shape_cast %103 : vector<8x1x32xf32> to vector<8x32xf32>
    %105 = arith.truncf %104 : vector<8x32xf32> to vector<8x32xbf16>
    %c0_60 = arith.constant 0 : index
    %c0_61 = arith.constant 0 : index
    %c0_62 = arith.constant 0 : index
    %106 = vector.load %arg5[%c0_60, %c0_61, %c0_62] : memref<2x8x32xbf16, #tpu.memory_space<vmem>>, vector<1x8x32xbf16>
    %107 = vector.shape_cast %106 : vector<1x8x32xbf16> to vector<8x32xbf16>
    %108 = vector.shape_cast %105 : vector<8x32xbf16> to vector<1x8x32xbf16>
    tpu.vector_store %arg5[%c0_60, %c0_61, %c0_62], %108 {strides = array<i32>} : memref<2x8x32xbf16, #tpu.memory_space<vmem>>, vector<1x8x32xbf16>,
    %c0_63 = arith.constant 0 : index
    %c1 = arith.constant 1 : index
    %c0_64 = arith.constant 0 : index
    %109 = vector.load %arg7[%c0_63, %c1, %c0_64] : memref<8x2x32xf32, #tpu.memory_space<vmem>>, vector<8x1x32xf32>
    %110 = vector.shape_cast %109 : vector<8x1x32xf32> to vector<8x32xf32>
    %111 = arith.truncf %110 : vector<8x32xf32> to vector<8x32xbf16>
    %c1_65 = arith.constant 1 : index
    %c0_66 = arith.constant 0 : index
    %c0_67 = arith.constant 0 : index
    %112 = vector.load %arg5[%c1_65, %c0_66, %c0_67] : memref<2x8x32xbf16, #tpu.memory_space<vmem>>, vector<1x8x32xbf16>
    %113 = vector.shape_cast %112 : vector<1x8x32xbf16> to vector<8x32xbf16>
    %114 = vector.shape_cast %111 : vector<8x32xbf16> to vector<1x8x32xbf16>
    tpu.vector_store %arg5[%c1_65, %c0_66, %c0_67], %114 {strides = array<i32>} : memref<2x8x32xbf16, #tpu.memory_space<vmem>>, vector<1x8x32xbf16>,
    return
  }
  func.func @transform_0(%arg0: i32) -> (i32, i32, i32) {
    %c0_i32 = arith.constant 0 : i32
    %c0_i32_0 = arith.constant 0 : i32
    %c0_i32_1 = arith.constant 0 : i32
    return %arg0, %c0_i32, %c0_i32_0 : i32, i32, i32
  }
  func.func @transform_1(%arg0: i32) -> (i32, i32) {
    %c0_i32 = arith.constant 0 : i32
    %c0_i32_0 = arith.constant 0 : i32
    %c0_i32_1 = arith.constant 0 : i32
    return %c0_i32, %c0_i32_0 : i32, i32
  }
  func.func @transform_2(%arg0: i32) -> (i32, i32) {
    %c0_i32 = arith.constant 0 : i32
    %c0_i32_0 = arith.constant 0 : i32
    %c0_i32_1 = arith.constant 0 : i32
    return %c0_i32, %c0_i32_0 : i32, i32
  }
  func.func @transform_3(%arg0: i32) -> (i32, i32) {
    %c0_i32 = arith.constant 0 : i32
    %c0_i32_0 = arith.constant 0 : i32
    %c0_i32_1 = arith.constant 0 : i32
    return %c0_i32, %c0_i32_0 : i32, i32
  }
  func.func @transform_4(%arg0: i32) -> (i32, i32, i32) {
    %c0_i32 = arith.constant 0 : i32
    %c0_i32_0 = arith.constant 0 : i32
    %c0_i32_1 = arith.constant 0 : i32
    return %c0_i32, %arg0, %c0_i32_0 : i32, i32, i32
  }
}

</mosaic_0001>

<bundles_post_ra>
// kernel: tpu_custom_call.1
= control target key start
LH: loop header
LB: loop body
LE: loop exit
PB: predicated region body
PF: predicated region fallthrough
CT: control target
= control target key end

     0   :  { %9 = vsyncpa [#allocation5], 0  ;;  %s1844_s0 = inlined_call_operand.hbm [shape: bf16[16,2,32], index: 0, kind: input, shape index: {}]   ;;  %s1845_s1 = inlined_call_operand.hbm [shape: bf16[32,32], index: 1, kind: input, shape index: {}]   ;;  %s1846_s2 = inlined_call_operand.hbm [shape: bf16[32,32], index: 2, kind: input, shape index: {}]   ;;  %s1847_s3 = inlined_call_operand.vmem [shape: f32[1,32], index: 3, kind: input, shape index: {}]   ;;  %s1848_s4 = inlined_call_operand.hbm [shape: bf16[2,16,32], index: 4, kind: output, shape index: {}]  }
   0x1   :  { %11 = vsyncpa [#allocation5 + $0x1], 0 }
   0x2   :  { %12 = vsyncpa [#allocation8], 0 }
   0x3   :  { %13 = vsyncpa [#allocation6], 0 }
   0x4   :  { %15 = vsyncpa [#allocation6 + $0x1], 0  ;;  %s1547_s15 = smov 0   ;;  %s1549_s16 = smov 0  }
   0x5   :  { %s1551_s17 = smov 0   ;;  %s1553_s18 = smov 0  }
   0x6 LB: > { %s1568_s19 = sadd.s32 4294967295, %s1504_s18   ;;  %s1092_s20 = sadd.s32 4294967294, %s1504_s18   ;;  %s1504_s18 = sphi %s1553_s18, %s1871_s18   ;;  %s1500_s17 = sphi %s1551_s17, %s1870_s17   ;;  %s1496_s16 = sphi %s1549_s16, %s1869_s16   ;;  %s1492_s15 = sphi %s1547_s15, %s1868_s15  }
   0x7   : > { %p41_p0 = scmp.ne.s32.totalorder %s1496_s16, %s1492_s15  ;;  %p1849_p1 = scmp.eq.s32.totalorder %s1568_s19, 0 }
   0x8   : > { %p134_p3 = scmp.eq.s32.totalorder %s1092_s20, 1  ;;  %p1093_p5 = scmp.ge.s32.totalorder %s1504_s18, 1 }
   0x9   : > { %p1577_p4 = por %p1849_p1, %p41_p0  ;;  %p141_p7 = scmp.lt.s32.totalorder %s1504_s18, 3 }
   0xa   : > { %p1582_p6 = por %p134_p3, %p41_p0  ;;  %s1506_s24 = smov [#allocation7]  }
   0xb   : > { %s1853_s21 = scalar_select %p1577_p4, 1, 0 }
   0xc   : > { %s1854_s22 = scalar_select %p1582_p6, 1, 0 }
   0xd   : > { %p1588_p9 = pnand %p1093_p5, %p141_p7  ;;  %s153_s25 = sshll.u32 %s1506_s24, 4  ;;  %s154_s25 = int_to_ptr.vmem [resolvable:$true] %s153_s25 }
   0xe   : > { %s1507_s27 = smov [#allocation9]   ;;  %s1367_s29 = scalar_lea.vmem %s154_s25, 256 }
   0xf   : > { %s1855_s23 = scalar_select %p1588_p9, 1, 0 }
  0x10   : > { %p1269_p10 = pneg %p1588_p9  ;;  %s166_s28 = sshll.u32 %s1507_s27, 4  ;;  %s167_s28 = int_to_ptr.vmem [resolvable:$true] %s166_s28 }
  0x11   : > { %p1368_p0 = scmp.ne.s32.totalorder %s154_s25, %s1367_s29  ;;  %p1375_p7 = scmp.lt.s32.totalorder %s154_s25, %s154_s25 }
  0x12   : > { %p1597_p12 = pnand %p1269_p10, %p1849_p1  ;;  %p1376_p11 = scmp.lt.s32.totalorder %s1367_s29, %s1367_s29 }
  0x14   : > { %p1358_p13 = pneg %p1597_p12  ;;  %p1377_p8 = por %p1376_p11, %p1375_p7 }
  0x16   : > { %p1370_p3 = pnand %p1368_p0, %p1358_p13 }
  0x18   : > { %p1371_p5 = pneg %p1370_p3 }
  0x1a   : > { %p1378_p10 = pnand %p1377_p8, %p1371_p5 }
  0x1c   : > { %1381 = shalt.err (!%p1378_p10)
}
  0x1d   : > { %s1508_s30 = smov 64   ;;  %s1509_s5 = smov 4  }
  0x1e   : > { %1272 = dma.hbm_to_vmem [thread:$0]  (!%p1597_p12), %s1845_s1, 256, %s154_s25, [#allocation8], %s1508_s30, %s1508_s30, %s1509_s5  }
  0x1f   : > { %s1393_s8 = scalar_lea.vmem %s167_s28, 256  ;;  %p1401_p2 = scmp.lt.s32.totalorder %s167_s28, %s167_s28 }
  0x20   : > { %p1394_p1 = scmp.ne.s32.totalorder %s167_s28, %s1393_s8  ;;  %p1402_p6 = scmp.lt.s32.totalorder %s1393_s8, %s1393_s8 }
  0x22   : > { %p1396_p0 = pnand %p1394_p1, %p1358_p13  ;;  %p1403_p11 = por %p1402_p6, %p1401_p2 }
  0x24   : > { %p1397_p3 = pneg %p1396_p0 }
  0x26   : > { %p1404_p8 = pnand %p1403_p11, %p1397_p3 }
  0x28   : > { %1407 = shalt.err (!%p1404_p8)
}
  0x29   : > { %1275 = dma.hbm_to_vmem [thread:$0]  (!%p1597_p12), %s1846_s2, 256, %s167_s28, [#allocation8], %s1508_s30, %s1508_s30, %s1509_s5  }
  0x2a   : > { %s1620_s11 = sadd.s32 1, %s1504_s18   ;;  %s28_s12 = sadd.s32 1, %s1500_s17 }
  0x2b   : > { %s25_s13 = ssub.s32 %s1504_s18, %s1620_s11  ;;  %p35_p1 = scmp.ne.s32.totalorder %s1500_s17, %s1496_s16 }
  0x2c   : > { %p26_p2 = scmp.eq.s32.totalorder %s25_s13, 0  ;;  %p36_p6 = scmp.eq.s32.totalorder %s1504_s18, 0 }
  0x2d   : > { %p1857_p13 = scmp.eq.s32.totalorder %s1568_s19, 1  ;;  %p1286_p7 = scmp.lt.s32.totalorder %s1504_s18, 2 }
  0x2e   : > { %s1636_s20 = scalar_select %p26_p2, %s1500_s17, %s28_s12  }
  0x2f   : > { %p1630_p5 = por %p1857_p13, %p35_p1  ;;  %p37_p10 = por %p36_p6, %p35_p1 }
  0x30   : > { %s183_s24 = sand.u32 1, %s1500_s17   ;;  %s1141_s26 = sshll.u32 %s1504_s18, 7 }
  0x31   : > { %s1858_s14 = scalar_select %p1630_p5, 1, 0 }
  0x32   : > { %s1097_s25 = sshll.u32 %s183_s24, 3  ;;  %s1643_s29 = scalar_lea.hbm %s1844_s0, %s1141_s26 }
  0x33   : > { %s187_s30 = scalar_lea.vmem [#allocation4], %s1097_s25  ;;  %p1647_p12 = pnand %p1286_p7, %p37_p10 }
  0x34   : > { %s194_s5 = sshll.u32 %s187_s30, 4  ;;  %s1651_s7 = scalar_lea.sflag [#allocation5], %s183_s24  ;;  %s1645_s5 = int_to_ptr.vmem [resolvable:$true] %s194_s5 }
  0x35   : > { %s1408_s8 = scalar_lea.hbm %s1643_s29, 128  ;;  %p1410_p3 = pneg %p1647_p12 }
  0x36   : > { %p1409_p0 = scmp.ne.s32.totalorder %s1643_s29, %s1408_s8  ;;  %s1413_s12 = scalar_lea.hbm %s1844_s0, 256 }
  0x37   : > { %p1414_p1 = scmp.lt.s32.totalorder %s1643_s29, %s1844_s0  ;;  %p1415_p2 = scmp.lt.s32.totalorder %s1413_s12, %s1408_s8 }
  0x38   : > { %p1411_p11 = pnand %p1410_p3, %p1409_p0 }
  0x39   : > { %p1416_p6 = por %p1415_p2, %p1414_p1 }
  0x3a   : > { %p1412_p8 = pneg %p1411_p11 }
  0x3c   : > { %p1417_p13 = pnand %p1416_p6, %p1412_p8 }
  0x3e   : > { %1420 = shalt.err (!%p1417_p13)
}
  0x3f   : > { %s1421_s24 = scalar_lea.vmem %s1645_s5, 128  ;;  %s1510_s26 = smov [#allocation4]  }
  0x40   : > { %p1422_p7 = scmp.ne.s32.totalorder %s1645_s5, %s1421_s24  ;;  %s1426_s27 = sshll.u32 %s1510_s26, 4  ;;  %s1427_s27 = int_to_ptr.vmem [resolvable:$false] %s1426_s27 }
  0x41   : > { %s1428_s28 = scalar_lea.vmem %s1427_s27, 256  ;;  %p1429_p11 = scmp.lt.s32.totalorder %s1645_s5, %s1427_s27 }
  0x42   : > { %p1424_p10 = pnand %p1422_p7, %p1410_p3  ;;  %p1430_p5 = scmp.lt.s32.totalorder %s1428_s28, %s1421_s24 }
  0x44   : > { %p1425_p0 = pneg %p1424_p10  ;;  %p1431_p4 = por %p1430_p5, %p1429_p11 }
  0x46   : > { %p1432_p9 = pnand %p1431_p4, %p1425_p0 }
  0x48   : > { %1435 = shalt.err (!%p1432_p9)
}
  0x49   : > { %s1511_s30 = smov 16   ;;  %s1512_s8 = smov 1  }
  0x4a   : > { %1279 = dma.hbm_to_vmem [thread:$0]  (!%p1647_p12), %s1643_s29, 128, %s1645_s5, %s1651_s7, %s1511_s30, %s1511_s30, %s1512_s8  }
  0x4b   : > { %p1860_p3 = scmp.ne.s32.totalorder %s1855_s23, 0 }
  0x4c   : > { %s1675_s9 = sand.u32 (!%p1860_p3), 1, %s1496_s16   ;;  %p1861_p4 = scmp.ne.s32.totalorder (!%p1860_p3), %s1853_s21, 0 }
  0x4d   : > { %206 = sbr.rel (%p1860_p3) target bundleno = 1843 (0x733), region = 36  ;;  %s1101_s10 = sshll.u32 (!%p1860_p3), %s1675_s9, 3 }
  0x4e   : > { %s209_s12 = scalar_lea.sflag (!%p1860_p3), [#allocation5], %s1675_s9  ;;  %s1679_s13 = scalar_lea.vmem (!%p1860_p3), [#allocation4], %s1101_s10 }
  0x52   : > { %1479 = dma.done.wait (%p1861_p4), %s209_s12, 128  }
  0x53   : > { %1481 = vsyncadd (%p1861_p4), %s209_s12, 4294967168  ;;  %p1862_p9 = scmp.eq.s32.totalorder %s1568_s19, 0 }
  0x55   : > { %1483 = dma.done.wait (%p1862_p9), [#allocation8], 512   ;;  %p1863_p5 = pmov %p1862_p9 }
  0x56   : > { %s1689_s23 = scalar_lea.vmem [#allocation10], %s1101_s10  ;;  %p1864_p12 = scmp.ne.s32.totalorder %s1568_s19, 0 }
  0x57   : > { %1485 = vsyncadd (%p1863_p5), [#allocation8], 4294966784 }
  0x58   : > { %250 = sbr.rel (%p1864_p12) target bundleno = 95 (0x5f), region = 52 }
  0x5d   : > { %vm251_vm0 = vcmask 254976   ;;  %v1513_v0 = vmov 0.0  }
  0x5e   : > { %252 = vst.msk [vmem:[#allocation2] sm:$0x3] %vm251_vm0, %v1513_v0 }
  0x5f PF: > { %v1336_v1 = vld [vmem:[#allocation7 + $0x8] sm:$0xff]   ;;  %v1514_v2 = vmov 0.0   ;;  %v1337_v3 = vld [vmem:[#allocation7] sm:$0xff]   ;;  %vm1515_vm1 = vmmov 0   ;;  %v1697_v4 = vld [vmem:[#allocation9 + $0x8] sm:$0xff]   ;;  %v287_v5 = vlaneseq  ;;  %vm341_vm2 = vcmask 261120  }
  0x60   : > { %1185 = vmatprep.subr.bf16.mxu0 %v1514_v2  ;;  %1193 = vmatprep.subr.bf16.mxu1 %v1514_v2  ;;  %v253_v6 = vld [vmem:[%s1679_s13] sm:$0x1]  ;;  %v254_v7 = vld [vmem:[%s1679_s13 + $0x1] sm:$0x1]  ;;  %v255_v8 = vld [vmem:[%s1679_s13 + $0x2] sm:$0x1] }
  0x61   : > { %1186 = vmatpush3.bf16.msra.mxu0 %v1336_v1  ;;  %1189 = vmatprep.mubr.msk.bf16.mxu0 %vm1515_vm1, %v1514_v2  ;;  %v256_v9 = vld [vmem:[%s1679_s13 + $0x3] sm:$0x1]  ;;  %v257_v10 = vld [vmem:[%s1679_s13 + $0x4] sm:$0x1]  ;;  %v258_v11 = vld [vmem:[%s1679_s13 + $0x5] sm:$0x1]  ;;  %v280_v18 = vcombine.low %v253_v6, %v254_v7 }
  0x62   : > { %1187 = vmatprep.subr.bf16.mxu0 %v1514_v2  ;;  %1197 = vmatprep.mubr.msk.bf16.mxu1 %vm1515_vm1, %v1514_v2  ;;  %v259_v12 = vld [vmem:[%s1679_s13 + $0x6] sm:$0x1]  ;;  %v260_v13 = vld [vmem:[%s1679_s13 + $0x7] sm:$0x1]  ;;  %v1516_v14 = vmov 1966171168   ;;  %v281_v19 = vcombine.low %v255_v8, %v256_v9  ;;  %v282_v21 = vcombine.low %v257_v10, %v258_v11 }
  0x63   : > { %1194 = vmatpush3.bf16.msra.mxu1 %v1697_v4  ;;  %v285_v15 = vunpack.c.l.s4 %v1516_v14  ;;  %v288_v16 = vshrl.u32 %v287_v5, 7  ;;  %v1712_v17 = vld [vmem:[#allocation9] sm:$0xff]   ;;  %v283_v22 = vcombine.low %v259_v12, %v260_v13  ;;  %v1517_v35 = vmov 1983009808   ;;  %v1106_v42 = vld [vmem:[%s1847_s3] ss:$0 sm:$0xff] }
  0x64   : > { %1195 = vmatprep.subr.bf16.mxu1 %v1514_v2  ;;  %v390_v36 = vunpack.c.l.s4 %v1517_v35  ;;  %vm430_vm3 = vcmask 254976   ;;  %vm897_vm4 = vcmask 1041409   ;;  %vm900_vm5 = vcmask 1042434   ;;  %s1138_s5 = sshll.u32 %s1568_s19, 6  ;;  %s1000_s6 = sshll.u32 %s1689_s23, 4  ;;  %s1799_s6 = int_to_ptr.vmem [resolvable:$true] %s1000_s6 }
  0x65   : > { %1188 = vmatpush3.bf16.msra.mxu0 %v1337_v3  ;;  %v443_v20 = vld [vmem:[#allocation2] sm:$0x3]  ;;  %v286_v23 = vunpack.c.0.s8 %v285_v15  ;;  %vm903_vm6 = vcmask 1043459   ;;  %vm906_vm7 = vcmask 1044484   ;;  %vm909_vm8 = vcmask 1045509   ;;  %s1797_s19 = scalar_lea.hbm %s1848_s4, %s1138_s5  ;;  %s988_s24 = scalar_lea.sflag [#allocation6], %s1675_s9 }
  0x66   : > { %1201 = vmatprep.subr.bf16.mxu0 %v1514_v2  ;;  %v445_v24 = vpack.c.bf16 %v443_v20, %v443_v20  ;;  %v391_v39 = vunpack.c.0.s8 %v390_v36  ;;  %vm912_vm9 = vcmask 1046534   ;;  %vm915_vm10 = vcmask 1047559   ;;  %s1436_s26 = scalar_lea.vmem %s1799_s6, 128  ;;  %p1865_p1 = scmp.ne.s32.totalorder %s1858_s14, 0 }
  0x67   : > { %1196 = vmatpush3.bf16.msra.mxu1 %v1712_v17  ;;  %v289_v25 = vsub.s32 %v286_v23, %v288_v16  ;;  %vm919_vm11 = vcmask 257024   ;;  %p1437_p8 = scmp.ne.s32.totalorder %s1799_s6, %s1436_s26  ;;  %s1518_s27 = smov [#allocation10]  }
  0x68   : > { %1209 = vmatprep.subr.bf16.mxu1 %v1514_v2  ;;  %v394_v43 = vsub.s32 %v391_v39, %v288_v16  ;;  %s1440_s28 = sshll.u32 %s1518_s27, 4  ;;  %s1441_s28 = int_to_ptr.vmem [resolvable:$false] %s1440_s28 }
  0x69   : > { %v290_v26 = vrot.slane %v280_v18, %v289_v25  ;;  %v297_v27 = vrot.slane %v281_v19, %v289_v25  ;;  %v304_v28 = vrot.slane %v282_v21, %v289_v25  ;;  %v311_v29 = vrot.slane %v283_v22, %v289_v25  ;;  %p1438_p2 = pnand %p1437_p8, %p1865_p1  ;;  %s1442_s30 = scalar_lea.vmem %s1441_s28, 256 }
  0x6a   : > { %1198 = vmatmul.mubr.msk.bf16.vlgmr.msra.gmra.mxu1 %vm341_vm2, %v445_v24  ;;  %p1443_p13 = scmp.lt.s32.totalorder %s1799_s6, %s1441_s28  ;;  %p1444_p7 = scmp.lt.s32.totalorder %s1442_s30, %s1436_s26 }
  0x6b   : > { %1210 = vmatpush3.bf16.msra.mxu1 %v1697_v4  ;;  %1213 = vmatprep.mubr.msk.bf16.mxu1 %vm1515_vm1, %v1514_v2  ;;  %v312_v30 = vcombine.low %v290_v26, %v297_v27  ;;  %v313_v31 = vcombine.low %v304_v28, %v311_v29  ;;  %p1439_p6 = pneg %p1438_p2 }
  0x6c   : > { %1211 = vmatprep.subr.bf16.mxu1 %v1514_v2  ;;  %p1445_p10 = por %p1444_p7, %p1443_p13 }
  0x6d   : > { %v320_v32 = vrot.slane %v312_v30, %v289_v25  ;;  %v327_v33 = vrot.slane %v313_v31, %v289_v25 }
  0x6e   : > { %p1446_p0 = pnand %p1445_p10, %p1439_p6 }
  0x6f   : > { %1212 = vmatpush3.bf16.msra.mxu1 %v1712_v17  ;;  %v328_v34 = vcombine.low %v320_v32, %v327_v33 }
  0x70   : > { %1225 = vmatprep.subr.bf16.mxu1 %v1514_v2 }
  0x71   : > { %1190 = vmatmul.mubr.msk.bf16.vlgmr.msra.gmra.mxu0 %vm341_vm2, %v328_v34 }
  0x72   : > { %1202 = vmatpush3.bf16.msra.mxu0 %v1697_v4  ;;  %1205 = vmatprep.mubr.msk.bf16.mxu0 %vm1515_vm1, %v1514_v2 }
  0x73   : > { %1203 = vmatprep.subr.bf16.mxu0 %v1514_v2 }
  0x76   : > { %1204 = vmatpush3.bf16.msra.mxu0 %v1712_v17 }
  0x77   : > { %1217 = vmatprep.subr.bf16.mxu0 %v1514_v2 }
 0x12a   : > { %v495_v37 = vpop.f32.mrf.mxu1 }
 0x12c   : > { %v1199_v38 = vpop.f32.mrf.mxu1 }
 0x12e   : > { %v498_v40 = vpop.f32.mrf.mxu1 }
 0x130   : > { %v1200_v41 = vpop.f32.mrf.mxu1 }
 0x131   : > { %v379_v44 = vpop.f32.mrf.mxu0 }
 0x132   : > { %v380_v45 = vadd.f32 %v1106_v42, %v379_v44 }
 0x133   : > { %v1191_v46 = vpop.f32.mrf.mxu0 }
 0x134   : > { %v388_v47 = vcombine.high %v380_v45, %v380_v45  ;;  %v395_v48 = vrot.slane %v380_v45, %v394_v43 }
 0x135   : > { %v382_v49 = vpop.f32.mrf.mxu0 }
 0x136   : > { %v402_v50 = vrot.slane %v388_v47, %v394_v43  ;;  %v403_v51 = vcombine.high %v395_v48, %v395_v48  ;;  %431 = vst.msk [vmem:[#allocation3] sm:$0x3] %vm430_vm3, %v395_v48  ;;  %v383_v52 = vadd.f32 %v1106_v42, %v382_v49 }
 0x137   : > { %v1192_v53 = vpop.f32.mrf.mxu0 }
 0x138   : > { %v404_v54 = vcombine.high %v402_v50, %v402_v50  ;;  %432 = vst.msk [vmem:[#allocation3 + $0x2] sm:$0x3] %vm430_vm3, %v403_v51  ;;  %433 = vst.msk [vmem:[#allocation3 + $0x4] sm:$0x3] %vm430_vm3, %v402_v50  ;;  %v405_v55 = vcombine.high %v383_v52, %v383_v52  ;;  %v412_v56 = vrot.slane %v383_v52, %v394_v43 }
 0x13a   : > { %434 = vst.msk [vmem:[#allocation3 + $0x6] sm:$0x3] %vm430_vm3, %v404_v54  ;;  %v419_v57 = vrot.slane %v405_v55, %v394_v43  ;;  %v420_v58 = vcombine.high %v412_v56, %v412_v56  ;;  %435 = vst.msk [vmem:[#allocation3 + $0x8] sm:$0x3] %vm430_vm3, %v412_v56 }
 0x13c   : > { %v421_v59 = vcombine.high %v419_v57, %v419_v57  ;;  %436 = vst.msk [vmem:[#allocation3 + $0xa] sm:$0x3] %vm430_vm3, %v420_v58  ;;  %437 = vst.msk [vmem:[#allocation3 + $0xc] sm:$0x3] %vm430_vm3, %v419_v57 }
 0x13d   : > { %v444_v60 = vld [vmem:[#allocation3] sm:$0x3] }
 0x13e   : > { %438 = vst.msk [vmem:[#allocation3 + $0xe] sm:$0x3] %vm430_vm3, %v421_v59  ;;  %v501_v61 = vadd.f32 %v495_v37, %v444_v60 }
 0x13f   : > { %v505_v0 = vld [vmem:[#allocation3 + $0x2] sm:$0x3]  ;;  %v554_v10 = vld [vmem:[#allocation3 + $0x4] sm:$0x3] }
 0x140   : > { %1340 = vtanh.f32 %v501_v61 }
 0x141   : > { %v603_v19 = vld [vmem:[#allocation3 + $0x6] sm:$0x3]  ;;  %v652_v27 = vld [vmem:[#allocation3 + $0x8] sm:$0x3] }
 0x143   : > { %v701_v35 = vld [vmem:[#allocation3 + $0xa] sm:$0x3] }
 0x145   : > { %v799_v48 = vld [vmem:[#allocation3 + $0xe] sm:$0x3] }
 0x14d   : > { %v1341_v62 = vpop.eup %1340 }
 0x14e   : > { %503 = vst.msk [vmem:[#allocation3] sm:$0x3] %vm430_vm3, %v1341_v62  ;;  %v506_v63 = vpack.c.bf16 %v1341_v62, %v1341_v62 }
 0x150   : > { %1206 = vmatmul.mubr.msk.bf16.vlgmr.msra.gmra.mxu0 %vm341_vm2, %v506_v63 }
 0x151   : > { %1218 = vmatpush3.bf16.msra.mxu0 %v1697_v4  ;;  %1221 = vmatprep.mubr.msk.bf16.mxu0 %vm1515_vm1, %v1514_v2 }
 0x152   : > { %1219 = vmatprep.subr.bf16.mxu0 %v1514_v2 }
 0x155   : > { %1220 = vmatpush3.bf16.msra.mxu0 %v1712_v17  ;;  %v848_v61 = vld [vmem:[#allocation3] sm:$0x1] }
 0x156   : > { %1233 = vmatprep.subr.bf16.mxu0 %v1514_v2 }
 0x210   : > { %v544_v1 = vpop.f32.mrf.mxu0 }
 0x211   : > { %v550_v3 = vadd.f32 %v544_v1, %v505_v0 }
 0x212   : > { %v1207_v5 = vpop.f32.mrf.mxu0 }
 0x213   : > { %1342 = vtanh.f32 %v550_v3 }
 0x214   : > { %v547_v6 = vpop.f32.mrf.mxu0 }
 0x216   : > { %v1208_v7 = vpop.f32.mrf.mxu0 }
 0x220   : > { %v1343_v8 = vpop.eup %1342 }
 0x221   : > { %552 = vst.msk [vmem:[#allocation3 + $0x2] sm:$0x3] %vm430_vm3, %v1343_v8  ;;  %v555_v9 = vpack.c.bf16 %v1343_v8, %v1343_v8  ;;  %v921_v8 = vld [vmem:[#allocation3 + $0x1] sm:$0x1] }
 0x223   : > { %1214 = vmatmul.mubr.msk.bf16.vlgmr.msra.gmra.mxu1 %vm341_vm2, %v555_v9 }
 0x224   : > { %1226 = vmatpush3.bf16.msra.mxu1 %v1697_v4  ;;  %1229 = vmatprep.mubr.msk.bf16.mxu1 %vm1515_vm1, %v1514_v2 }
 0x225   : > { %1227 = vmatprep.subr.bf16.mxu1 %v1514_v2 }
 0x228   : > { %1228 = vmatpush3.bf16.msra.mxu1 %v1712_v17  ;;  %v849_v54 = vld [vmem:[#allocation3 + $0x2] sm:$0x1]  ;;  %v922_v55 = vld [vmem:[#allocation3 + $0x3] sm:$0x1] }
 0x229   : > { %1241 = vmatprep.subr.bf16.mxu1 %v1514_v2  ;;  %v1143_v58 = vpack.c.bf16 %v849_v54, %v849_v54  ;;  %v1151_v60 = vpack.c.bf16 %v922_v55, %v922_v55 }
 0x22b   : > { %v889_v7 = vunpack.c.l.b16 %v1143_v58 }
 0x2e3   : > { %v593_v11 = vpop.f32.mrf.mxu1 }
 0x2e4   : > { %v599_v12 = vadd.f32 %v593_v11, %v554_v10  ;;  %v1142_v11 = vpack.c.bf16 %v848_v61, %v848_v61 }
 0x2e5   : > { %v1215_v13 = vpop.f32.mrf.mxu1 }
 0x2e6   : > { %1344 = vtanh.f32 %v599_v12 }
 0x2e7   : > { %v596_v14 = vpop.f32.mrf.mxu1 }
 0x2e8   : > { %v962_v14 = vunpack.c.l.b16 %v1151_v60 }
 0x2e9   : > { %v1216_v15 = vpop.f32.mrf.mxu1 }
 0x2f3   : > { %v1345_v16 = vpop.eup %1344 }
 0x2f4   : > { %601 = vst.msk [vmem:[#allocation3 + $0x4] sm:$0x3] %vm430_vm3, %v1345_v16  ;;  %v604_v18 = vpack.c.bf16 %v1345_v16, %v1345_v16 }
 0x2f6   : > { %1222 = vmatmul.mubr.msk.bf16.vlgmr.msra.gmra.mxu0 %vm341_vm2, %v604_v18 }
 0x2f7   : > { %1234 = vmatpush3.bf16.msra.mxu0 %v1697_v4  ;;  %1237 = vmatprep.mubr.msk.bf16.mxu0 %vm1515_vm1, %v1514_v2 }
 0x2f8   : > { %1235 = vmatprep.subr.bf16.mxu0 %v1514_v2 }
 0x2fb   : > { %1236 = vmatpush3.bf16.msra.mxu0 %v1712_v17  ;;  %v850_v56 = vld [vmem:[#allocation3 + $0x4] sm:$0x1]  ;;  %v923_v57 = vld [vmem:[#allocation3 + $0x5] sm:$0x1] }
 0x2fc   : > { %1249 = vmatprep.subr.bf16.mxu0 %v1514_v2  ;;  %v1144_v62 = vpack.c.bf16 %v850_v56, %v850_v56  ;;  %v1152_v0 = vpack.c.bf16 %v923_v57, %v923_v57 }
 0x2fe   : > { %v890_v18 = vunpack.c.l.b16 %v1144_v62 }
 0x3b6   : > { %v642_v20 = vpop.f32.mrf.mxu0 }
 0x3b7   : > { %v648_v21 = vadd.f32 %v642_v20, %v603_v19  ;;  %v963_v20 = vunpack.c.l.b16 %v1152_v0 }
 0x3b8   : > { %v1223_v22 = vpop.f32.mrf.mxu0 }
 0x3b9   : > { %1346 = vtanh.f32 %v648_v21  ;;  %v1150_v22 = vpack.c.bf16 %v921_v8, %v921_v8 }
 0x3ba   : > { %v645_v23 = vpop.f32.mrf.mxu0 }
 0x3bc   : > { %v1224_v24 = vpop.f32.mrf.mxu0 }
 0x3c6   : > { %v1347_v25 = vpop.eup %1346 }
 0x3c7   : > { %650 = vst.msk [vmem:[#allocation3 + $0x6] sm:$0x3] %vm430_vm3, %v1347_v25  ;;  %v653_v26 = vpack.c.bf16 %v1347_v25, %v1347_v25 }
 0x3c9   : > { %1230 = vmatmul.mubr.msk.bf16.vlgmr.msra.gmra.mxu1 %vm341_vm2, %v653_v26  ;;  %v896_v26 = vrot.slane %v889_v7, 7 }
 0x3ca   : > { %1242 = vmatpush3.bf16.msra.mxu1 %v1697_v4  ;;  %1245 = vmatprep.mubr.msk.bf16.mxu1 %vm1515_vm1, %v1514_v2 }
 0x3cb   : > { %1243 = vmatprep.subr.bf16.mxu1 %v1514_v2 }
 0x3ce   : > { %1244 = vmatpush3.bf16.msra.mxu1 %v1712_v17  ;;  %v851_v59 = vld [vmem:[#allocation3 + $0x6] sm:$0x1]  ;;  %v924_v63 = vld [vmem:[#allocation3 + $0x7] sm:$0x1] }
 0x3cf   : > { %v1145_v6 = vpack.c.bf16 %v851_v59, %v851_v59  ;;  %v1153_v13 = vpack.c.bf16 %v924_v63, %v924_v63 }
 0x3d1   : > { %v891_v25 = vunpack.c.l.b16 %v1145_v6 }
 0x489   : > { %v691_v28 = vpop.f32.mrf.mxu1 }
 0x48a   : > { %v697_v29 = vadd.f32 %v691_v28, %v652_v27  ;;  %v888_v28 = vunpack.c.l.b16 %v1142_v11 }
 0x48b   : > { %v1231_v30 = vpop.f32.mrf.mxu1 }
 0x48c   : > { %1348 = vtanh.f32 %v697_v29  ;;  %v964_v29 = vunpack.c.l.b16 %v1153_v13  ;;  %v969_v30 = vrot.slane %v962_v14, 7 }
 0x48d   : > { %v694_v31 = vpop.f32.mrf.mxu1 }
 0x48f   : > { %v1232_v32 = vpop.f32.mrf.mxu1 }
 0x490   : > { %v899_v32 = vrot.slane %v890_v18, 6 }
 0x499   : > { %v1349_v33 = vpop.eup %1348 }
 0x49a   : > { %699 = vst.msk [vmem:[#allocation3 + $0x8] sm:$0x3] %vm430_vm3, %v1349_v33  ;;  %v702_v34 = vpack.c.bf16 %v1349_v33, %v1349_v33 }
 0x49c   : > { %1238 = vmatmul.mubr.msk.bf16.vlgmr.msra.gmra.mxu0 %vm341_vm2, %v702_v34  ;;  %v971_v34 = vrot.slane %v963_v20, 6 }
 0x49d   : > { %1250 = vmatpush3.bf16.msra.mxu0 %v1697_v4  ;;  %1253 = vmatprep.mubr.msk.bf16.mxu0 %vm1515_vm1, %v1514_v2  ;;  %v750_v4 = vld [vmem:[#allocation3 + $0xc] sm:$0x3] }
 0x49e   : > { %1251 = vmatprep.subr.bf16.mxu0 %v1514_v2 }
 0x4a1   : > { %1252 = vmatpush3.bf16.msra.mxu0 %v1712_v17  ;;  %v852_v1 = vld [vmem:[#allocation3 + $0x8] sm:$0x1]  ;;  %v925_v3 = vld [vmem:[#allocation3 + $0x9] sm:$0x1] }
 0x4a2   : > { %v1146_v16 = vpack.c.bf16 %v852_v1, %v852_v1  ;;  %v1154_v19 = vpack.c.bf16 %v925_v3, %v925_v3 }
 0x4a4   : > { %v892_v31 = vunpack.c.l.b16 %v1146_v16  ;;  %v965_v33 = vunpack.c.l.b16 %v1154_v19 }
 0x55c   : > { %v740_v36 = vpop.f32.mrf.mxu0 }
 0x55d   : > { %v746_v37 = vadd.f32 %v740_v36, %v701_v35  ;;  %v961_v36 = vunpack.c.l.b16 %v1150_v22 }
 0x55e   : > { %v1239_v38 = vpop.f32.mrf.mxu0 }
 0x55f   : > { %1350 = vtanh.f32 %v746_v37 }
 0x560   : > { %v743_v39 = vpop.f32.mrf.mxu0 }
 0x561   : > { %v898_v39 = vsel %vm897_vm4, %v896_v26, %v888_v28 }
 0x562   : > { %v1240_v40 = vpop.f32.mrf.mxu0 }
 0x563   : > { %v902_v40 = vrot.slane %v891_v25, 5 }
 0x56c   : > { %v1351_v41 = vpop.eup %1350 }
 0x56d   : > { %748 = vst.msk [vmem:[#allocation3 + $0xa] sm:$0x3] %vm430_vm3, %v1351_v41  ;;  %v751_v42 = vpack.c.bf16 %v1351_v41, %v1351_v41 }
 0x56f   : > { %1246 = vmatmul.mubr.msk.bf16.vlgmr.msra.gmra.mxu1 %vm341_vm2, %v751_v42  ;;  %v970_v42 = vsel %vm897_vm4, %v969_v30, %v961_v36 }
 0x574   : > { %v853_v5 = vld [vmem:[#allocation3 + $0xa] sm:$0x1]  ;;  %v926_v9 = vld [vmem:[#allocation3 + $0xb] sm:$0x1] }
 0x575   : > { %v1147_v21 = vpack.c.bf16 %v853_v5, %v853_v5  ;;  %v1155_v23 = vpack.c.bf16 %v926_v9, %v926_v9 }
 0x577   : > { %v893_v35 = vunpack.c.l.b16 %v1147_v21  ;;  %v966_v37 = vunpack.c.l.b16 %v1155_v23 }
 0x62f   : > { %v789_v43 = vpop.f32.mrf.mxu1 }
 0x630   : > { %v795_v44 = vadd.f32 %v789_v43, %v750_v4  ;;  %v973_v4 = vrot.slane %v964_v29, 5 }
 0x631   : > { %v1247_v45 = vpop.f32.mrf.mxu1 }
 0x632   : > { %1352 = vtanh.f32 %v795_v44  ;;  %v901_v44 = vsel %vm900_vm5, %v899_v32, %v898_v39  ;;  %v905_v45 = vrot.slane %v892_v31, 4 }
 0x633   : > { %v792_v2 = vpop.f32.mrf.mxu1 }
 0x635   : > { %v1248_v17 = vpop.f32.mrf.mxu1 }
 0x636   : > { %v972_v17 = vsel %vm900_vm5, %v971_v34, %v970_v42 }
 0x637   : > { %v974_v56 = vsel %vm903_vm6, %v973_v4, %v972_v17 }
 0x63f   : > { %v1353_v46 = vpop.eup %1352 }
 0x640   : > { %797 = vst.msk [vmem:[#allocation3 + $0xc] sm:$0x3] %vm430_vm3, %v1353_v46  ;;  %v800_v47 = vpack.c.bf16 %v1353_v46, %v1353_v46  ;;  %v975_v46 = vrot.slane %v965_v33, 4 }
 0x642   : > { %1254 = vmatmul.mubr.msk.bf16.vlgmr.msra.gmra.mxu0 %vm341_vm2, %v800_v47  ;;  %v976_v58 = vsel %vm906_vm7, %v975_v46, %v974_v56 }
 0x647   : > { %v854_v10 = vld [vmem:[#allocation3 + $0xc] sm:$0x1]  ;;  %v927_v12 = vld [vmem:[#allocation3 + $0xd] sm:$0x1] }
 0x648   : > { %v1148_v24 = vpack.c.bf16 %v854_v10, %v854_v10  ;;  %v1156_v27 = vpack.c.bf16 %v927_v12, %v927_v12 }
 0x64a   : > { %v894_v38 = vunpack.c.l.b16 %v1148_v24  ;;  %v967_v41 = vunpack.c.l.b16 %v1156_v27 }
 0x702   : > { %v838_v49 = vpop.f32.mrf.mxu0 }
 0x703   : > { %v844_v50 = vadd.f32 %v838_v49, %v799_v48  ;;  %v908_v48 = vrot.slane %v893_v35, 3 }
 0x704   : > { %v1255_v51 = vpop.f32.mrf.mxu0 }
 0x705   : > { %1354 = vtanh.f32 %v844_v50  ;;  %v977_v50 = vrot.slane %v966_v37, 3  ;;  %v904_v51 = vsel %vm903_vm6, %v902_v40, %v901_v44 }
 0x706   : > { %v841_v52 = vpop.f32.mrf.mxu0  ;;  %v907_v57 = vsel %vm906_vm7, %v905_v45, %v904_v51 }
 0x707   : > { %v911_v52 = vrot.slane %v894_v38, 2  ;;  %v910_v59 = vsel %vm909_vm8, %v908_v48, %v907_v57  ;;  %v978_v61 = vsel %vm909_vm8, %v977_v50, %v976_v58 }
 0x708   : > { %v1256_v53 = vpop.f32.mrf.mxu0 }
 0x709   : > { %v979_v53 = vrot.slane %v967_v41, 2  ;;  %v913_v63 = vsel %vm912_vm9, %v911_v52, %v910_v59 }
 0x70b   : > { %v980_v0 = vsel %vm912_vm9, %v979_v53, %v978_v61 }
 0x712   : > { %v1355_v15 = vpop.eup %1354 }
 0x713   : > { %846 = vst.msk [vmem:[#allocation3 + $0xe] sm:$0x3] %vm430_vm3, %v1355_v15  ;;  %847 = vst.msk [vmem:[#allocation2] sm:$0x3] %vm430_vm3, %v1355_v15 }
 0x71a   : > { %v855_v43 = vld [vmem:[#allocation3 + $0xe] sm:$0x1]  ;;  %v928_v2 = vld [vmem:[#allocation3 + $0xf] sm:$0x1] }
 0x71b   : > { %v1149_v47 = vpack.c.bf16 %v855_v43, %v855_v43  ;;  %v1157_v49 = vpack.c.bf16 %v928_v2, %v928_v2 }
 0x71d   : > { %v895_v54 = vunpack.c.l.b16 %v1149_v47  ;;  %v968_v55 = vunpack.c.l.b16 %v1157_v49 }
 0x71f   : > { %v914_v60 = vrot.slane %v895_v54, 1  ;;  %v981_v62 = vrot.slane %v968_v55, 1 }
 0x721   : > { %v916_v1 = vsel %vm915_vm10, %v914_v60, %v913_v63  ;;  %v982_v3 = vsel %vm915_vm10, %v981_v62, %v980_v0 }
 0x722   : > { %v917_v5 = vpack.c.b16 %v916_v1, %v916_v1  ;;  %v983_v6 = vpack.c.b16 %v982_v3, %v982_v3 }
 0x724   : > { %920 = vst.msk [vmem:[%s1689_s23] sm:$0xf] %vm919_vm11, %v917_v5  ;;  %1136 = vst.msk [vmem:[%s1689_s23 + $0x4] sm:$0xf] %vm919_vm11, %v983_v6 }
 0x725   : > { %1449 = shalt.err (!%p1446_p0)
}
 0x726   : > { %s1450_s8 = scalar_lea.hbm %s1797_s19, 128  ;;  %s1454_s13 = scalar_lea.hbm %s1848_s4, 256 }
 0x727   : > { %p1451_p11 = scmp.ne.s32.totalorder %s1797_s19, %s1450_s8  ;;  %p1455_p9 = scmp.lt.s32.totalorder %s1797_s19, %s1848_s4 }
 0x728   : > { %p1456_p5 = scmp.lt.s32.totalorder %s1454_s13, %s1450_s8 }
 0x729   : > { %p1452_p3 = pnand %p1451_p11, %p1865_p1 }
 0x72a   : > { %p1457_p12 = por %p1456_p5, %p1455_p9 }
 0x72b   : > { %p1453_p4 = pneg %p1452_p3 }
 0x72d   : > { %p1458_p8 = pnand %p1457_p12, %p1453_p4 }
 0x72f   : > { %1461 = shalt.err (!%p1458_p8)
}
 0x730   : > { %s1519_s29 = smov 64   ;;  %s1520_s5 = smov 128  }
 0x731   : > { %s1521_s7 = smov 4  }
 0x732   : > { %1267 = dma.vmem_to_hbm [thread:$0]  (%p1865_p1), %s1799_s6, 128, %s1797_s19, %s988_s24, %s1519_s29, %s1520_s5, %s1521_s7  }
 0x733 PF: > { %s1015_s25 = sand.u32 1, %s1492_s15   ;;  %p1866_p2 = scmp.ne.s32.totalorder %s1854_s22, 0 }
 0x734   : > { %p1867_p6 = scmp.ge.s32.totalorder %s1504_s18, 2  ;;  %s1016_s26 = scalar_lea.sflag [#allocation6], %s1015_s25 }
 0x736   : > { %p1281_p13 = pnand %p1867_p6, %p1866_p2 }
 0x738   : > { %p1282_p7 = pneg %p1281_p13 }
 0x73a   : > { %1487 = dma.done.wait (%p1282_p7), %s1016_s26, 128  }
 0x73b   : > { %1489 = vsyncadd (%p1282_p7), %s1016_s26, 4294967168  ;;  %p18_p10 = scmp.ge.s32.totalorder %s1620_s11, 4   ;;  %s1868_s15 = smov %s1496_s16 }
 0x73c   : > { %s1869_s16 = smov %s1500_s17  ;;  %s1870_s17 = smov %s1636_s20 }
 0x73d   : > { %s1871_s18 = smov %s1620_s11  ;;  %20 = sbr.rel (!%p18_p10) target bundleno = 6 (0x6), region = 101 }
 0x742   :  { %1021 = vsyncpa [#allocation5], 1 }
 0x743   :  { %1023 = vsyncpa [#allocation5 + $0x1], 1 }
 0x744   :  { %1024 = vsyncpa [#allocation8], 1 }
 0x745   :  { %1025 = vsyncpa [#allocation6], 1 }
 0x746   :  { %1027 = vsyncpa [#allocation6 + $0x1], 1 }

</bundles_post_ra>
